<compile_context>
chip_gen: v5e
topology: v5e:2x2
jax: 0.10.0
libtpu: 0.0.40
codegen_flags: <defaults>
</compile_context>

<pallas_src>
import jax
import jax.numpy as jnp
from jax.experimental import pallas as pl
from jax.experimental.pallas import tpu as pltpu


# ----------------------------- helpers --------------------------------------

def _round_up(n, m):
    return (n + m - 1) // m * m


def _sublane_multiple(dtype):
    # Sub-32-bit dtypes pack along sublanes: 8 rows (4B), 16 (2B), 32 (1B).
    return {4: 8, 2: 16, 1: 32}.get(jnp.dtype(dtype).itemsize, 8)


def _vmem_capacity_bytes():
    try:
        return int(pltpu.get_tpu_info().vmem_capacity_bytes)
    except Exception:
        return 64 * 1024 * 1024  # conservative default: v7x per-TC VMEM


def _divisors(n):
    return [d for d in range(1, n + 1) if n % d == 0]


def _vmem_need(tb, tl, H, x_dtype, m_dtype):
    """Padded VMEM bytes for one pipelined block set (x, mask, denom, out)."""
    sub_x = _sublane_multiple(x_dtype)
    sub_m = _sublane_multiple(m_dtype)
    x_blk = tb * _round_up(tl, sub_x) * _round_up(H, 128) * jnp.dtype(x_dtype).itemsize
    # (tb, tl, 1) mask block is lane-padded to 128 in VMEM.
    m_blk = tb * _round_up(tl, sub_m) * 128 * jnp.dtype(m_dtype).itemsize
    d_blk = _round_up(tb, 8) * 128 * 4                      # (tb, 1) f32 denom
    o_blk = _round_up(tb, 8) * _round_up(H, 128) * 4        # (tb, H) f32 output
    # Pipelined inputs are double-buffered; count the output slab twice as headroom.
    return 2 * (x_blk + m_blk + d_blk) + 2 * o_blk


def _pick_tiles(B, L, H, x_dtype, m_dtype, budget):
    sub_x = _sublane_multiple(x_dtype)
    # Output block is (tb, H): tb must be a multiple of 8 or equal B.
    tb_cands = [d for d in _divisors(B) if d == B or d % 8 == 0]
    # Prefer >= 2 batch programs (v7x 2-TC sharding), then the largest tile.
    tb_cands.sort(key=lambda d: (d != B, d), reverse=True)
    # x block is (tb, tl, H): tl must match x's sublane packing or equal L.
    tl_cands = [d for d in _divisors(L) if d == L or d % sub_x == 0]
    tl_cands.sort(reverse=True)
    for tb in tb_cands:
        for tl in tl_cands:
            if _vmem_need(tb, tl, H, x_dtype, m_dtype) <= budget:
                return tb, tl
    return min(tb_cands), min(tl_cands)  # best effort: smallest legal tiles


# ------------------------------ kernel --------------------------------------

def mean_pool_kernel(x_ref, m_ref, d_ref, o_ref):
    # x_ref: (TB, TL, H)  hidden-state tile (native dtype)
    # m_ref: (TB, TL, 1)  attention-mask tile (x's dtype; 0/1 values)
    # d_ref: (TB, 1)      clamped mask count, f32 (precomputed in the wrapper)
    # o_ref: (TB, H)      f32 output block, resident across the l axis and
    #                     used directly as the masked-sum accumulator.
    li = pl.program_id(1)

    @pl.when(li == 0)
    def _():
        o_ref[...] = jnp.zeros_like(o_ref)

    x = x_ref[...].astype(jnp.float32)          # (TB, TL, H)
    m = m_ref[...].astype(jnp.float32)          # (TB, TL, 1) lane broadcast over H
    o_ref[...] += jnp.sum(x * m, axis=1)        # masked partial sum -> (TB, H)

    @pl.when(li == pl.num_programs(1) - 1)
    def _():
        o_ref[...] = o_ref[...] / d_ref[...]    # denom already clamped >= 1e-9


# ------------------------------ wrapper --------------------------------------

def mean_pooling(last_hidden_state, attention_mask, *, tb=None, tl=None):
    """last_hidden_state: (B, L, H); attention_mask: (B, L). Returns (B, H) f32."""
    x = last_hidden_state
    B, L, H = x.shape
    assert attention_mask.shape == (B, L)

    # Mask streams in x's dtype (0/1 is exact in bf16) so HBM/VMEM bytes match x.
    m_dtype = x.dtype if jnp.issubdtype(x.dtype, jnp.floating) else jnp.float32

    phys = _vmem_capacity_bytes()
    budget = int(phys * 0.70)  # leave headroom below the physical capacity

    auto_tb, auto_tl = _pick_tiles(B, L, H, x.dtype, m_dtype, budget)
    tb = auto_tb if tb is None else tb
    tl = auto_tl if tl is None else tl

    sub_x = _sublane_multiple(x.dtype)
    assert B % tb == 0 and L % tl == 0, "tile sizes must divide the array dims"
    assert tb == B or tb % 8 == 0, "tb must be a multiple of 8 (f32 output sublanes)"
    assert tl == L or tl % sub_x == 0, (
        f"tl must be a multiple of {sub_x} for dtype {x.dtype}")

    # Mask channel-expanded to (B, L, 1): broadcast over H inside the kernel is
    # a cheap lane broadcast (mask sits on sublanes, same layout as x's L axis).
    mask3 = attention_mask.astype(m_dtype)[..., None]
    # Clamped denominator: one tiny wrapper-side reduce instead of per-step sums.
    denom = jnp.maximum(
        jnp.sum(attention_mask.astype(jnp.float32), axis=1, keepdims=True), 1e-9)

    need = _vmem_need(tb, tl, H, x.dtype, m_dtype)
    vmem_limit = int(min(max(need + (4 << 20), 32 << 20), int(phys * 0.75)))

    grid = (B // tb, L // tl)
    return pl.pallas_call(
        mean_pool_kernel,
        out_shape=jax.ShapeDtypeStruct((B, H), jnp.float32),
        grid_spec=pltpu.PrefetchScalarGridSpec(
            num_scalar_prefetch=0,
            grid=grid,
            in_specs=[
                pl.BlockSpec((tb, tl, H), lambda b, l: (b, l, 0)),   # x
                pl.BlockSpec((tb, tl, 1), lambda b, l: (b, l, 0)),   # mask
                pl.BlockSpec((tb, 1), lambda b, l: (b, 0)),          # clamped denom
            ],
            out_specs=pl.BlockSpec((tb, H), lambda b, l: (b, 0)),
        ),
        compiler_params=pltpu.CompilerParams(
            dimension_semantics=("parallel", "arbitrary"),
            vmem_limit_bytes=vmem_limit),
    )(x, mask3, denom)


def mean_pooling_ref(x, mask):
    """Pure-JAX reference matching the PyTorch MeanPooling.forward semantics."""
    m = mask.astype(jnp.float32)[..., None]
    s = jnp.sum(x.astype(jnp.float32) * m, axis=1)
    d = jnp.maximum(jnp.sum(m, axis=1), 1e-9)
    return s / d


if __name__ == "__main__":
    key = jax.random.PRNGKey(0)
    k1, k2 = jax.random.split(key)

    # --- small shapes consistent with the module's forward: (B, L, H) ---
    B, L, H = 2, 8, 32
    x = jax.random.normal(k1, (B, L, H), jnp.float32)
    lengths = jnp.array([8, 5], jnp.int32)
    mask = (jnp.arange(L)[None, :] < lengths[:, None]).astype(jnp.int32)

    out = jax.block_until_ready(mean_pooling(x, mask))
    ref = mean_pooling_ref(x, mask)
    assert out.shape == (B, H), out.shape
    assert jnp.allclose(out, ref, rtol=1e-5, atol=1e-5), (out, ref)

    # --- bf16 path: batch split across >=2 programs, tiled L reduction ---
    B2, L2, H2 = 16, 256, 128
    x2 = jax.random.normal(k2, (B2, L2, H2), jnp.float32).astype(jnp.bfloat16)
    lengths2 = jnp.arange(1, B2 + 1, dtype=jnp.int32) * (L2 // B2)
    mask2 = (jnp.arange(L2)[None, :] < lengths2[:, None]).astype(jnp.int32)

    ref2 = mean_pooling_ref(x2, mask2)
    out2 = jax.block_until_ready(mean_pooling(x2, mask2, tl=64))   # 4 L-steps
    assert jnp.allclose(out2, ref2, rtol=1e-4, atol=1e-4)

    out3 = jax.block_until_ready(mean_pooling(x2, mask2))          # auto tiles
    assert jnp.allclose(out3, ref2, rtol=1e-4, atol=1e-4)

    print("KERNEL_OK")
</pallas_src>

<mosaic_0001>
module attributes {stable_mosaic.version = 11 : i64} {
  func.func @mean_pool_kernel(%arg0: i32, %arg1: i32, %arg2: memref<2x8x32xf32, #tpu.memory_space<vmem>>, %arg3: memref<2x8x1xf32, #tpu.memory_space<vmem>>, %arg4: memref<2x1xf32, #tpu.memory_space<vmem>>, %arg5: memref<2x32xf32, #tpu.memory_space<vmem>>) attributes {dimension_semantics = [#tpu.dimension_semantics<parallel>, #tpu.dimension_semantics<arbitrary>], iteration_bounds = array<i64: 1, 1>, scalar_prefetch = 0 : i64, scratch_operands = 0 : i64, tpu.core_type = #tpu.core_type<tc>, window_params = [{transform_indices = @transform_0, window_bounds = array<i64: 2, 8, 32>}, {transform_indices = @transform_1, window_bounds = array<i64: 2, 8, 1>}, {transform_indices = @transform_2, window_bounds = array<i64: 2, 1>}, {transform_indices = @transform_3, window_bounds = array<i64: 2, 32>}]} {
    %c0_i32 = arith.constant 0 : i32
    %0 = arith.cmpi eq, %arg1, %c0_i32 : i32
    %1 = arith.extui %0 : i1 to i32
    %c0_i32_0 = arith.constant 0 : i32
    %2 = arith.cmpi ne, %1, %c0_i32_0 : i32
    scf.if %2 {
      %cst_12 = arith.constant 0.000000e+00 : f32
      %14 = vector.broadcast %cst_12 : f32 to vector<2x32xf32>
      %c0_13 = arith.constant 0 : index
      %c0_14 = arith.constant 0 : index
      %15 = vector.load %arg5[%c0_13, %c0_14] : memref<2x32xf32, #tpu.memory_space<vmem>>, vector<2x32xf32>
      tpu.vector_store %arg5[%c0_13, %c0_14], %14 {strides = array<i32>} : memref<2x32xf32, #tpu.memory_space<vmem>>, vector<2x32xf32>,
    } else {
    }
    %c0 = arith.constant 0 : index
    %c0_1 = arith.constant 0 : index
    %c0_2 = arith.constant 0 : index
    %3 = vector.load %arg2[%c0, %c0_1, %c0_2] : memref<2x8x32xf32, #tpu.memory_space<vmem>>, vector<2x8x32xf32>
    %c0_3 = arith.constant 0 : index
    %c0_4 = arith.constant 0 : index
    %c0_5 = arith.constant 0 : index
    %4 = vector.load %arg3[%c0_3, %c0_4, %c0_5] : memref<2x8x1xf32, #tpu.memory_space<vmem>>, vector<2x8x1xf32>
    %c0_6 = arith.constant 0 : index
    %c0_7 = arith.constant 0 : index
    %5 = vector.load %arg5[%c0_6, %c0_7] : memref<2x32xf32, #tpu.memory_space<vmem>>, vector<2x32xf32>
    %6 = vector.broadcast %4 : vector<2x8x1xf32> to vector<2x8x32xf32>
    %7 = arith.mulf %3, %6 : vector<2x8x32xf32>
    %cst = arith.constant dense<0.000000e+00> : vector<2x32xf32>
    %8 = vector.multi_reduction <add>, %7, %cst [1] : vector<2x8x32xf32> to vector<2x32xf32>
    %9 = arith.addf %5, %8 : vector<2x32xf32>
    %c0_8 = arith.constant 0 : index
    %c0_9 = arith.constant 0 : index
    %10 = vector.load %arg5[%c0_8, %c0_9] : memref<2x32xf32, #tpu.memory_space<vmem>>, vector<2x32xf32>
    tpu.vector_store %arg5[%c0_8, %c0_9], %9 {strides = array<i32>} : memref<2x32xf32, #tpu.memory_space<vmem>>, vector<2x32xf32>,
    %c0_i32_10 = arith.constant 0 : i32
    %11 = arith.cmpi eq, %arg1, %c0_i32_10 : i32
    %12 = arith.extui %11 : i1 to i32
    %c0_i32_11 = arith.constant 0 : i32
    %13 = arith.cmpi ne, %12, %c0_i32_11 : i32
    scf.if %13 {
      %c0_12 = arith.constant 0 : index
      %c0_13 = arith.constant 0 : index
      %14 = vector.load %arg5[%c0_12, %c0_13] : memref<2x32xf32, #tpu.memory_space<vmem>>, vector<2x32xf32>
      %c0_14 = arith.constant 0 : index
      %c0_15 = arith.constant 0 : index
      %15 = vector.load %arg4[%c0_14, %c0_15] : memref<2x1xf32, #tpu.memory_space<vmem>>, vector<2x1xf32>
      %16 = vector.broadcast %15 : vector<2x1xf32> to vector<2x32xf32>
      %17 = arith.divf %14, %16 : vector<2x32xf32>
      %c0_16 = arith.constant 0 : index
      %c0_17 = arith.constant 0 : index
      %18 = vector.load %arg5[%c0_16, %c0_17] : memref<2x32xf32, #tpu.memory_space<vmem>>, vector<2x32xf32>
      tpu.vector_store %arg5[%c0_16, %c0_17], %17 {strides = array<i32>} : memref<2x32xf32, #tpu.memory_space<vmem>>, vector<2x32xf32>,
    } else {
    }
    return
  }
  func.func @transform_0(%arg0: i32, %arg1: i32) -> (i32, i32, i32) {
    %c0_i32 = arith.constant 0 : i32
    %c0_i32_0 = arith.constant 0 : i32
    return %arg0, %arg1, %c0_i32 : i32, i32, i32
  }
  func.func @transform_1(%arg0: i32, %arg1: i32) -> (i32, i32, i32) {
    %c0_i32 = arith.constant 0 : i32
    %c0_i32_0 = arith.constant 0 : i32
    return %arg0, %arg1, %c0_i32 : i32, i32, i32
  }
  func.func @transform_2(%arg0: i32, %arg1: i32) -> (i32, i32) {
    %c0_i32 = arith.constant 0 : i32
    %c0_i32_0 = arith.constant 0 : i32
    return %arg0, %c0_i32 : i32, i32
  }
  func.func @transform_3(%arg0: i32, %arg1: i32) -> (i32, i32) {
    %c0_i32 = arith.constant 0 : i32
    %c0_i32_0 = arith.constant 0 : i32
    return %arg0, %c0_i32 : i32, i32
  }
}

</mosaic_0001>

<bundles_post_ra>
// kernel: tpu_custom_call.1
= control target key start
LH: loop header
LB: loop body
LE: loop exit
PB: predicated region body
PF: predicated region fallthrough
CT: control target
= control target key end

     0   :  { %v136_v2 = vmov 0   ;;  %s180_s0 = inlined_call_operand.vmem [shape: f32[2,8,32], index: 0, kind: input, shape index: {}]   ;;  %s181_s1 = inlined_call_operand.vmem [shape: f32[2,8,1], index: 1, kind: input, shape index: {}]   ;;  %s182_s2 = inlined_call_operand.vmem [shape: f32[2,1], index: 2, kind: input, shape index: {}]   ;;  %s183_s3 = inlined_call_operand.hbm [shape: f32[2,32], index: 3, kind: output, shape index: {}]  }
   0x1   :  { %v23_v0 = vld [vmem:[%s181_s1] sm:$0xff]  ;;  %106 = vset.pattern.permute.xlu0 %v136_v2  ;;  %107 = vset.pattern.permute.xlu1 %v136_v2 }
   0x2   :  { %v65_v1 = vld [vmem:[%s182_s2] sm:$0x3] }
   0x3   :  { %8 = vsyncpa [#allocation3], 0  ;;  %28 = vperm.xlu0 %106, %v23_v0   ;;  %68 = vperm.xlu1 %107, %v65_v1   ;;  %v24_v3 = vld [vmem:[%s181_s1 + $0x8] sm:$0xff]  ;;  %vm19_vm0 = vcmask 254976   ;;  %v137_v4 = vmov 0.0   ;;  %v21_v5 = vld [vmem:[%s180_s0] sm:$0xff] }
   0x4   :  { %20 = vst.msk [vmem:[#allocation2] sm:$0x3] %vm19_vm0, %v137_v4  ;;  %vm38_vm1 = vcmask 261120   ;;  %v22_v12 = vld [vmem:[%s180_s0 + $0x8] sm:$0xff]  ;;  %vm55_vm2 = vcmask 1041409   ;;  %s138_s0 = smov [#allocation2]  }
   0x5   :  { %s92_s1 = sshll.u32 %s138_s0, 4  ;;  %s94_s23 = sshll.u32 %s183_s3, 4  ;;  %s93_s1 = int_to_ptr.vmem [resolvable:$true] %s92_s1  ;;  %s95_s23 = int_to_ptr.hbm [resolvable:$true] %s94_s23 }
   0xb   :  { %33 = vperm.xlu0 %106, %v24_v3   ;;  %v25_v29 = vld [vmem:[#allocation2] sm:$0x3] }
  0x75   :  { %v29_v6 = vpop.permute.xlu0 %28  ;;  %v69_v9 = vpop.permute.xlu1 %68 }
  0x76   :  { %v36_v7 = vmul.f32 %v29_v6, %v21_v5  ;;  %108 = vrcp.f32 %v69_v9  ;;  %vm76_vm3 = vweird.f32 %v69_v9  ;;  %v82_v33 = vand.u32 2147483648, %v69_v9 }
  0x77   :  { %v80_v35 = vand.u32 2147483647, %v69_v9 }
  0x78   :  { %v39_v8 = vsel %vm38_vm1, %v36_v7, 0.0  ;;  %v83_v36 = vor.u32 1.1754944e-38, %v82_v33 }
  0x79   :  { %v40_v10 = vrot.slane %v39_v8, 4  ;;  %vm81_vm6 = vcmp.eq.f32.partialorder %v80_v35, 8.507059e+37 }
  0x7b   :  { %v41_v11 = vadd.f32 %v40_v10, %v39_v8 }
  0x7c   :  { %v109_v17 = vpop.eup %108 }
  0x7d   :  { %v34_v13 = vpop.permute.xlu0 %33  ;;  %v42_v15 = vrot.slane %v41_v11, 2  ;;  %v72_v21 = vmul.f32 %v109_v17, %v69_v9  ;;  %vm77_vm4 = vweird.f32 %v109_v17 }
  0x7e   :  { %v37_v14 = vmul.f32 %v34_v13, %v22_v12  ;;  %vm78_vm5 = vmor %vm76_vm3, %vm77_vm4 }
  0x7f   :  { %v43_v19 = vadd.f32 %v42_v15, %v41_v11  ;;  %v73_v25 = vsub.f32 1.0, %v72_v21 }
  0x80   :  { %v46_v16 = vsel %vm38_vm1, %v37_v14, 0.0 }
  0x81   :  { %v47_v18 = vrot.slane %v46_v16, 4  ;;  %v44_v23 = vrot.slane %v43_v19, 1  ;;  %v74_v30 = vmul.f32 %v109_v17, %v73_v25 }
  0x83   :  { %v48_v20 = vadd.f32 %v47_v18, %v46_v16  ;;  %v45_v27 = vadd.f32 %v44_v23, %v43_v19  ;;  %v75_v34 = vadd.f32 %v109_v17, %v74_v30 }
  0x85   :  { %v49_v22 = vrot.slane %v48_v20, 2  ;;  %v79_v37 = vsel %vm78_vm5, %v109_v17, %v75_v34 }
  0x86   :  { %v84_v38 = vsel %vm81_vm6, %v83_v36, %v79_v37 }
  0x87   :  { %v50_v24 = vadd.f32 %v49_v22, %v48_v20 }
  0x89   :  { %v51_v26 = vrot.slane %v50_v24, 1 }
  0x8b   :  { %v52_v28 = vadd.f32 %v51_v26, %v50_v24 }
  0x8d   :  { %v56_v31 = vsel %vm55_vm2, %v52_v28, %v45_v27 }
  0x8e   :  { %v58_v32 = vadd.f32 %v56_v31, %v25_v29 }
  0x90   :  { %60 = vst.msk [vmem:[#allocation2] sm:$0x3] %vm19_vm0, %v58_v32 }
  0x97   :  { %v64_v39 = vld [vmem:[#allocation2] sm:$0x3] }
  0x98   :  { %v85_v40 = vmul.f32 %v84_v38, %v64_v39 }
  0x9a   :  { %86 = vst.msk [vmem:[#allocation2] sm:$0x3] %vm19_vm0, %v85_v40 }
  0x9b   :  { %97 = dma.vmem_to_hbm [thread:$0]  %s93_s1, 32, %s95_s23, [#allocation3]  }
  0x9c   :  { %134 = dma.done.wait [#allocation3], 32  }
  0x9d   :  { %135 = vsyncadd [#allocation3], 4294967264 }
  0x9e   :  { %102 = vsyncpa [#allocation3], 1 }

</bundles_post_ra>
